<compile_context>
chip_gen: v5e
topology: v5e:2x2
jax: 0.10.0
libtpu: 0.0.40
codegen_flags: <defaults>
</compile_context>

<pallas_src>
import functools
import math

import jax
import jax.numpy as jnp
from jax.experimental import pallas as pl
from jax.experimental.pallas import tpu as pltpu


_MIB = 1024 * 1024
_LANE = 128
_VMEM_LIMIT_FLOOR = 32 * _MIB   # v5e's default scoped VMEM limit is only 16 MiB.


def _round_up(v: int, m: int) -> int:
    return ((v + m - 1) // m) * m


def _sublane_pack(dtype) -> int:
    """Second-minor tile multiple for this dtype (8 f32 / 16 bf16 / 32 int8).

    Unknown itemsizes (e.g. 8-byte dtypes) conservatively use 8; that only
    under-estimates padding in the VMEM budget, it never affects correctness.
    """
    return {4: 8, 2: 16, 1: 32}.get(jnp.dtype(dtype).itemsize, 8)


def _padded_block_bytes(block_shape, dtype) -> int:
    """VMEM footprint of one buffer holding `block_shape`, counting the
    (sublane, lane) padding of the trailing two dims."""
    itemsize = jnp.dtype(dtype).itemsize
    pack = _sublane_pack(dtype)
    if len(block_shape) == 1:
        return _round_up(max(block_shape[0], 1), _LANE) * itemsize
    *lead, sm, ln = block_shape
    b = _round_up(max(sm, 1), pack) * _round_up(max(ln, 1), _LANE) * itemsize
    for d in lead:
        b *= max(d, 1)
    return b


@functools.lru_cache(maxsize=None)
def _vmem_capacity_bytes() -> int:
    """Per-core VMEM capacity (128 MiB on v5e/v6e, 64 MiB on v7x)."""
    try:
        cap = int(pltpu.get_tpu_info().vmem_capacity_bytes)
        if cap > 0:
            return cap
    except Exception:  # pragma: no cover - fall back conservatively (v7x-sized)
        pass
    return 64 * _MIB


def _pair_budget_bytes() -> int:
    """Byte budget for one (input block + output block) pair, single buffer.

    ~3/4 of physical VMEM is requested as the scoped limit and 1/3 of that is
    given to a single block pair, so the double-buffered pipeline (2x the
    pair) still leaves ~1/3 of the limit for compiler scratch.  This scales
    the tiles per generation: ~32 MiB/pair on v5e/v6e, ~16 MiB/pair on v7x.
    """
    return (_vmem_capacity_bytes() * 3 // 4) // 3


def _vmem_limit_bytes(in_block, out_block, dtype) -> int:
    # 2 pipeline buffers per operand + slack; never ask for all of physical
    # VMEM (v7x has only 64 MiB per TensorCore).
    need = 2 * (_padded_block_bytes(in_block, dtype)
                + _padded_block_bytes(out_block, dtype))
    need = int(need * 1.25) + _MIB
    hi = _vmem_capacity_bytes() - 4 * _MIB
    # Blocks are sized from the same budget, so `need` only exceeds `hi` when a
    # single full-extent lane axis alone is bigger than VMEM; in that case we
    # still request `hi` and let compilation surface the problem rather than
    # silently shrinking the pipeline.
    return max(min(need, hi), min(_VMEM_LIMIT_FLOOR, hi))


# ----------------------------------------------------------------------------
# Kernels (pure data movement on the VMEM-resident block).
# ----------------------------------------------------------------------------


def _move_minor_kernel(x_ref, o_ref):
    # (bB, C, tM) -> (bB, tM, C).  jnp.transpose is known to lower; the kernel
    # is DMA-bound so the XLU cost of the C->lane move is hidden.
    # TODO(synk): benchmark pltpu.einshape("bcm->bmc", ...) as a lower-XLU
    # alternative once the lane-dense output fold lands.
    o_ref[...] = jnp.transpose(x_ref[...], (0, 2, 1))


def _transpose_block_kernel(x_ref, o_ref, *, dims):
    o_ref[...] = jnp.transpose(x_ref[...], dims)


# ----------------------------------------------------------------------------
# Fast path: dims moves exactly one axis to the end (NCHW -> NHWC and friends).
# ----------------------------------------------------------------------------


def _moved_to_last_axis(dims):
    """If `dims` just moves one input axis to the end (all other axes keep
    their relative order), return that axis; else None.  E.g. (0,2,3,1) -> 1."""
    a = dims[-1]
    if dims[:-1] == tuple(d for d in range(len(dims)) if d != a):
        return a
    return None


def _permute_move_axis_to_last(x: jax.Array, dims, a: int) -> jax.Array:
    """Tiled kernel for dims = (0..a-1, a+1..n-1, a) with a <= ndim-3.

    Canonicalized to 3D: (B, C, M) -> (B, M, C) with B = prod(axes before a),
    C = moved axis, M = prod(axes after a).  Grid: (batch blocks, M tiles),
    both 'parallel' (independent output blocks, megacore friendly).
    """
    s = x.shape
    out_shape = tuple(s[d] for d in dims)
    dtype = x.dtype
    itemsize = jnp.dtype(dtype).itemsize
    pack = _sublane_pack(dtype)

    # --- canonicalize to 3D (free row-major regroupings outside the kernel) --
    B = math.prod(s[:a]) if a > 0 else 1
    C = s[a]
    M = math.prod(s[a + 1:])
    x3 = x.reshape(B, C, M)

    budget = _pair_budget_bytes()

    def in_bytes(bb, tm):    # (bb, C, tm) block, VMEM-padded
        return bb * _round_up(C, pack) * _round_up(tm, _LANE) * itemsize

    def out_bytes(bb, tm):   # (bb, tm, C) block, VMEM-padded (C < 128 pads!)
        return bb * _round_up(tm, pack) * _round_up(C, _LANE) * itemsize

    # M tile: multiple of 128 lanes (or full extent), as large as fits.
    k_needed = pl.cdiv(M, _LANE)
    unit = max(in_bytes(1, _LANE) + out_bytes(1, _LANE), 1)
    k = max(1, min(k_needed, budget // unit))
    tM = M if k >= k_needed else k * _LANE

    # Batch block: grow out of what is left of the budget (no more hard 1s).
    per_b = max(in_bytes(1, tM) + out_bytes(1, tM), 1)
    bB = max(1, min(B, budget // per_b))

    # Guarantee >= 2 grid steps when the tensor allows it: v7x has two
    # TensorCores, and >= 2 iterations let double buffering overlap DMA with
    # the in-block transpose on every generation.
    if pl.cdiv(B, bB) * pl.cdiv(M, tM) < 2:
        if k_needed >= 2:
            tM = _LANE * pl.cdiv(k_needed, 2)
        elif B >= 2:
            bB = pl.cdiv(B, 2)

    grid = (pl.cdiv(B, bB), pl.cdiv(M, tM))
    in_block = (bB, C, tM)
    out_block = (bB, tM, C)

    # NOTE(lane density): for C < 128 the stored last dim is lane-sparse; the
    # lane-dense (B, M*C) fold needs an in-kernel trailing-dim collapse that
    # Mosaic does not lower reliably -- see module header TODO(synk).  Its
    # padding cost is charged in out_bytes() above so the tiles stay VMEM-safe.
    # TODO(synk): sweep pipeline_mode=pl.Buffered(3) on the input spec once the
    # writeback is lane-dense (only a few % expected; keep compile risk low).
    y3 = pl.pallas_call(
        _move_minor_kernel,
        out_shape=jax.ShapeDtypeStruct((B, M, C), dtype),
        grid_spec=pltpu.PrefetchScalarGridSpec(
            num_scalar_prefetch=0,
            grid=grid,
            in_specs=[pl.BlockSpec(in_block, lambda bi, mi: (bi, 0, mi))],
            out_specs=pl.BlockSpec(out_block, lambda bi, mi: (bi, mi, 0)),
        ),
        compiler_params=pltpu.CompilerParams(
            dimension_semantics=("parallel", "parallel"),
            vmem_limit_bytes=_vmem_limit_bytes(in_block, out_block, dtype),
        ),
    )(x3)
    return y3.reshape(out_shape)


# ----------------------------------------------------------------------------
# General path: any permutation.
# ----------------------------------------------------------------------------


def _permute_general(x: jax.Array, dims) -> jax.Array:
    """General path, correct for any permutation.

    Blocks cover the union of the input's and output's trailing two axes, but
    those axes are now tiled (lane axes in multiples of 128, sublane-only axes
    in multiples of the dtype pack) when the full extents would exceed the
    VMEM budget; leading axes get grown blocks instead of hard-coded 1s.
    """
    n, s = x.ndim, x.shape
    out_shape = tuple(s[d] for d in dims)
    dtype = x.dtype
    pack = _sublane_pack(dtype)
    budget = _pair_budget_bytes()

    lane_axes = {n - 1, dims[-1]}
    trail = []
    for ax in (n - 2, n - 1, dims[-2], dims[-1]):
        if ax not in trail:
            trail.append(ax)
    mult = {ax: (_LANE if ax in lane_axes else pack) for ax in trail}
    lead = [ax for ax in range(n) if ax not in trail]

    blk = {ax: 1 for ax in range(n)}
    for ax in trail:
        blk[ax] = s[ax]

    def in_block():
        return tuple(blk[ax] for ax in range(n))

    def out_block():
        return tuple(blk[d] for d in dims)

    def pair_bytes():
        return (_padded_block_bytes(in_block(), dtype)
                + _padded_block_bytes(out_block(), dtype))

    # (a) Second-level tiling: shrink trailing tiles (largest first) in their
    #     sublane/lane multiples until the (in+out) pair fits the budget.
    def _shrinkable(ax):
        return blk[ax] > mult[ax]

    while pair_bytes() > budget and any(_shrinkable(ax) for ax in trail):
        ax = max((t for t in trail if _shrinkable(t)), key=lambda t: blk[t])
        m = mult[ax]
        blk[ax] = max(m, (blk[ax] // 2) // m * m)
    # If the lane axes alone exceed the budget we proceed and request a higher
    # scoped-VMEM limit below; compilation will surface truly impossible cases.

    # (b) Grow leading-axis blocks out of the remaining budget so tiny
    #     per-step blocks don't leave the pipeline overhead-bound.
    for ax in reversed(lead):
        cur = max(pair_bytes(), 1)
        f = budget // cur
        if f >= 2:
            blk[ax] = min(s[ax], blk[ax] * f)

    # (c) Guarantee >= 2 grid steps when possible (v7x megacore, pipelining).
    def _num_steps():
        r = 1
        for ax in range(n):
            r *= pl.cdiv(s[ax], blk[ax])
        return r

    if _num_steps() < 2:
        for ax in sorted(lead, key=lambda t: -s[t]) + sorted(
                trail, key=lambda t: -s[t]):
            lo = mult.get(ax, 1)
            half = pl.cdiv(pl.cdiv(s[ax], 2), lo) * lo
            if half < s[ax]:
                blk[ax] = half
                break

    gaxes = [ax for ax in range(n) if pl.cdiv(s[ax], blk[ax]) > 1]
    if gaxes:
        gpos = {ax: i for i, ax in enumerate(gaxes)}
        grid = tuple(pl.cdiv(s[ax], blk[ax]) for ax in gaxes)

        def in_index(*g):
            return tuple(g[gpos[ax]] if ax in gpos else 0 for ax in range(n))

        def out_index(*g):
            return tuple(g[gpos[d]] if d in gpos else 0 for d in dims)
    else:
        grid = (1,)

        def in_index(i):
            return (0,) * n

        def out_index(i):
            return (0,) * n

    ib, ob = in_block(), out_block()
    kernel = functools.partial(_transpose_block_kernel, dims=dims)
    return pl.pallas_call(
        kernel,
        out_shape=jax.ShapeDtypeStruct(out_shape, dtype),
        grid_spec=pltpu.PrefetchScalarGridSpec(
            num_scalar_prefetch=0,
            grid=grid,
            in_specs=[pl.BlockSpec(ib, in_index)],
            out_specs=pl.BlockSpec(ob, out_index),
        ),
        compiler_params=pltpu.CompilerParams(
            dimension_semantics=("parallel",) * len(grid),
            vmem_limit_bytes=_vmem_limit_bytes(ib, ob, dtype),
        ),
    )(x)


# ----------------------------------------------------------------------------
# Public API.
# ----------------------------------------------------------------------------


def permute(x: jax.Array, dims) -> jax.Array:
    """Pallas equivalent of torch.permute(x, dims)."""
    if x.ndim <= 1:
        assert len(dims) == x.ndim
        return x
    ndim = x.ndim
    dims = tuple(int(d) % ndim for d in dims)
    assert len(dims) == ndim and sorted(dims) == list(range(ndim)), dims

    if dims == tuple(range(ndim)):
        return x  # identity permutation (torch.permute returns a view)

    a = _moved_to_last_axis(dims)
    if ndim >= 3 and a is not None and a <= ndim - 3:
        # e.g. NCHW -> NHWC, NCDHW -> NDHWC, CHW -> HWC
        return _permute_move_axis_to_last(x, dims, a)
    return _permute_general(x, dims)


class Permute:
    """Mirror of the PyTorch nn.Module: Permute(*dims)(x) == torch.permute(x, dims)."""

    def __init__(self, *dims: int) -> None:
        self.dims = tuple(dims)

    def __call__(self, x: jax.Array) -> jax.Array:
        return permute(x, self.dims)


if __name__ == "__main__":
    key = jax.random.PRNGKey(0)
    # NCHW input, small shapes.
    x = jax.random.normal(key, (2, 4, 16, 16), dtype=jnp.float32)

    # Main case: NCHW -> NHWC via the canonicalized "move axis to last" path.
    module = Permute(0, 2, 3, 1)
    out = jax.block_until_ready(module(x))
    ref = jnp.transpose(x, (0, 2, 3, 1))
    assert out.shape == ref.shape, (out.shape, ref.shape)
    assert out.dtype == ref.dtype
    assert jnp.array_equal(out, ref), "Pallas permute mismatch for dims=(0, 2, 3, 1)"

    # General path (leading-axes-only permutation -> pure block relayout).
    dims2 = (1, 0, 2, 3)
    got = jax.block_until_ready(permute(x, dims2))
    want = jnp.transpose(x, dims2)
    assert got.shape == want.shape and got.dtype == want.dtype
    assert jnp.array_equal(got, want), f"Pallas permute mismatch for dims={dims2}"

    # Odd, non-128-aligned shape through the fast path (full-extent blocks).
    x2 = jax.random.normal(jax.random.PRNGKey(0), (2, 3, 8, 5), dtype=jnp.float32)
    got2 = jax.block_until_ready(permute(x2, (0, 2, 3, 1)))
    want2 = jnp.transpose(x2, (0, 2, 3, 1))
    assert got2.shape == want2.shape and jnp.array_equal(got2, want2), \
        "Pallas permute mismatch for odd-shaped NCHW -> NHWC"

    print("KERNEL_OK")
</pallas_src>

<mosaic_0001>
module attributes {stable_mosaic.version = 11 : i64} {
  func.func @_move_minor_kernel(%arg0: i32, %arg1: i32, %arg2: memref<2x4x128xf32, #tpu.memory_space<vmem>>, %arg3: memref<2x128x4xf32, #tpu.memory_space<vmem>>) attributes {dimension_semantics = [#tpu.dimension_semantics<parallel>, #tpu.dimension_semantics<parallel>], iteration_bounds = array<i64: 1, 2>, scalar_prefetch = 0 : i64, scratch_operands = 0 : i64, tpu.core_type = #tpu.core_type<tc>, window_params = [{transform_indices = @transform_0, window_bounds = array<i64: 2, 4, 128>}, {transform_indices = @transform_1, window_bounds = array<i64: 2, 128, 4>}]} {
    %c0 = arith.constant 0 : index
    %c0_0 = arith.constant 0 : index
    %c0_1 = arith.constant 0 : index
    %0 = vector.load %arg2[%c0, %c0_0, %c0_1] : memref<2x4x128xf32, #tpu.memory_space<vmem>>, vector<2x4x128xf32>
    %1 = tpu.transpose %0, [0, 2, 1] : vector<2x4x128xf32> -> vector<2x128x4xf32>
    %c0_2 = arith.constant 0 : index
    %c0_3 = arith.constant 0 : index
    %c0_4 = arith.constant 0 : index
    %2 = vector.load %arg3[%c0_2, %c0_3, %c0_4] : memref<2x128x4xf32, #tpu.memory_space<vmem>>, vector<2x128x4xf32>
    tpu.vector_store %arg3[%c0_2, %c0_3, %c0_4], %1 {strides = array<i32>} : memref<2x128x4xf32, #tpu.memory_space<vmem>>, vector<2x128x4xf32>,
    return
  }
  func.func @transform_0(%arg0: i32, %arg1: i32) -> (i32, i32, i32) {
    %c0_i32 = arith.constant 0 : i32
    %c0_i32_0 = arith.constant 0 : i32
    return %arg0, %c0_i32, %arg1 : i32, i32, i32
  }
  func.func @transform_1(%arg0: i32, %arg1: i32) -> (i32, i32, i32) {
    %c0_i32 = arith.constant 0 : i32
    %c0_i32_0 = arith.constant 0 : i32
    return %arg0, %arg1, %c0_i32 : i32, i32, i32
  }
}

</mosaic_0001>

<bundles_post_ra>
// kernel: tpu_custom_call.1
= control target key start
LH: loop header
LB: loop body
LE: loop exit
PB: predicated region body
PF: predicated region fallthrough
CT: control target
= control target key end

     0   :  { %6 = vsyncpa [#allocation3], 0  ;;  %s892_s0 = inlined_call_operand.hbm [shape: f32[2,4,256], index: 0, kind: input, shape index: {}]   ;;  %s893_s1 = inlined_call_operand.vmem [shape: f32[2,256,4], index: 1, kind: output, shape index: {}]  }
   0x1   :  { %8 = vsyncpa [#allocation3 + $0x1], 0  ;;  %s667_s6 = smov 0   ;;  %s669_s7 = smov 0  }
   0x2   :  { %s671_s8 = smov 0   ;;  %s673_s9 = smov 0  }
   0x3   :  { %s675_s10 = smov 0   ;;  %s677_s11 = smov 0  }
   0x4 LB: > { %s498_s12 = sadd.s32 4294967295, %s652_s11   ;;  %s23_s13 = sadd.s32 1, %s648_s10  ;;  %s652_s11 = sphi %s677_s11, %s14_s11   ;;  %s648_s10 = sphi %s675_s10, %s901_s10   ;;  %s644_s9 = sphi %s673_s9, %s900_s9   ;;  %s640_s8 = sphi %s671_s8, %s899_s8   ;;  %s636_s7 = sphi %s669_s7, %s898_s7   ;;  %s632_s6 = sphi %s667_s6, %s897_s6  }
   0x5   : > { %p24_p0 = scmp.ge.s32.totalorder %s23_s13, 2  ;;  %s35_s14 = sadd.s32 1, %s640_s8 }
   0x6   : > { %p42_p1 = scmp.ne.s32.totalorder %s640_s8, %s636_s7  ;;  %p43_p2 = scmp.eq.s32.totalorder %s652_s11, 0 }
   0x7   : > { %s903_s13 = smov (%p24_p0, %s23_s13), 0  ;;  %p48_p4 = scmp.ne.s32.totalorder %s636_s7, %s632_s6 }
   0x8   : > { %p703_p3 = por %p43_p2, %p42_p1  ;;  %s31_s16 = ssub.s32 %s648_s10, %s903_s13 }
   0x9   : > { %p49_p5 = scmp.eq.s32.totalorder %s498_s12, 0  ;;  %p33_p6 = scmp.eq.s32.totalorder %s31_s16, 0 }
   0xa   : > { %p74_p7 = scmp.eq.s32.totalorder %s498_s12, 1  ;;  %p519_p10 = scmp.lt.s32.totalorder %s652_s11, 2 }
   0xb   : > { %p710_p8 = por %p49_p5, %p48_p4  ;;  %s100_s20 = sand.u32 1, %s640_s8  }
   0xc   : > { %s715_s18 = scalar_select %p33_p6, %s640_s8, %s35_s14  }
   0xd   : > { %p717_p9 = por %p74_p7, %p42_p1  ;;  %s503_s21 = sshll.u32 %s648_s10, 2 }
   0xe   : > { %s502_s22 = sshll.u32 %s100_s20, 3  ;;  %s111_s25 = scalar_lea.hbm %s892_s0, %s503_s21 }
   0xf   : > { %s112_s26 = sshll.u32 %s111_s25, 4  ;;  %s104_s27 = scalar_lea.vmem [#allocation2], %s502_s22  ;;  %s113_s26 = int_to_ptr.hbm [resolvable:$true] %s112_s26 }
  0x10   : > { %s114_s28 = sshll.u32 %s104_s27, 4  ;;  %p516_p11 = pnand %p519_p10, %p703_p3  ;;  %s115_s28 = int_to_ptr.vmem [resolvable:$true] %s114_s28 }
  0x11   : > { %p504_p12 = scmp.ge.s32.totalorder %s652_s11, 1  ;;  %s101_s29 = scalar_lea.sflag [#allocation3], %s100_s20 }
  0x12   : > { %s654_s30 = smov 128   ;;  %s655_s2 = smov 64  }
  0x13   : > { %s656_s3 = smov 4   ;;  %p122_p13 = scmp.lt.s32.totalorder %s652_s11, 3 }
  0x14   : > { %518 = dma.hbm_to_vmem [thread:$0]  (!%p516_p11), %s113_s26, 128, %s115_s28, %s101_s29, %s654_s30, %s655_s2, %s656_s3  }
  0x15   : > { %p123_p0 = pnand %p504_p12, %p122_p13 }
  0x16   : > { %s128_s4 = sand.u32 (!%p123_p0), 1, %s636_s7  }
  0x17   : > { %126 = sbr.rel (%p123_p0) target bundleno = 452 (0x1c4), region = 24  ;;  %s505_s5 = sshll.u32 (!%p123_p0), %s128_s4, 3 }
  0x18   : > { %s129_s6 = scalar_lea.sflag (!%p123_p0), [#allocation3], %s128_s4  ;;  %s132_s12 = scalar_lea.vmem (!%p123_p0), [#allocation2], %s505_s5 }
  0x1c   : > { %627 = dma.done.wait (%p710_p8), %s129_s6, 128  }
  0x1d   : > { %629 = vsyncadd (%p710_p8), %s129_s6, 4294967168  ;;  %v154_v0 = vld [vmem:[%s132_s12] sm:$0xf]  ;;  %v155_v1 = vld [vmem:[%s132_s12 + $0x4] sm:$0xf]  ;;  %s506_s14 = sshll.u32 %s128_s4, 8 }
  0x1e   : > { %156 = vxpose.xlu0.b32.start.end [1/1] (short) %v154_v0, 128  ;;  %vm220_vm0 = vcmask 31744   ;;  %s736_s15 = scalar_lea.vmem [#allocation4], %s506_s14  ;;  %s512_s16 = sshll.u32 (%p717_p9), %s644_s9, 7 }
  0x1f   : > { %s810_s21 = scalar_lea.vmem (%p717_p9), %s893_s1, %s512_s16 }
  0x9e   : > { %188 = vxpose.xlu0.b32.start.end [1/1] (short) %v155_v1, 128 }
  0xc2   : > { %v172_v2 = vpop.trf.xlu0 }
  0xc3   : > { %221 = vst.msk [vmem:[%s736_s15] sm:$0xff] %vm220_vm0, %v172_v2 }
  0xca   : > { %v173_v3 = vpop.trf.xlu0  ;;  %v356_v34 = vld [vmem:[%s736_s15] sm:$0xff] (%p717_p9) }
  0xcb   : > { %222 = vst.msk [vmem:[%s736_s15 + $0x8] sm:$0xff] %vm220_vm0, %v173_v3 }
  0xcc   : > { %357 = vst [vmem:[%s810_s21] sm:$0xff] (%p717_p9), %v356_v34 }
  0xd2   : > { %v174_v4 = vpop.trf.xlu0  ;;  %v358_v35 = vld [vmem:[%s736_s15 + $0x8] sm:$0xff] (%p717_p9) }
  0xd3   : > { %223 = vst.msk [vmem:[%s736_s15 + $0x10] sm:$0xff] %vm220_vm0, %v174_v4 }
  0xd4   : > { %359 = vst [vmem:[%s810_s21 + $0x8] sm:$0xff] (%p717_p9), %v358_v35 }
  0xda   : > { %v175_v5 = vpop.trf.xlu0  ;;  %v360_v36 = vld [vmem:[%s736_s15 + $0x10] sm:$0xff] (%p717_p9) }
  0xdb   : > { %224 = vst.msk [vmem:[%s736_s15 + $0x18] sm:$0xff] %vm220_vm0, %v175_v5 }
  0xdc   : > { %361 = vst [vmem:[%s810_s21 + $0x10] sm:$0xff] (%p717_p9), %v360_v36 }
  0xe2   : > { %v176_v6 = vpop.trf.xlu0  ;;  %v362_v37 = vld [vmem:[%s736_s15 + $0x18] sm:$0xff] (%p717_p9) }
  0xe3   : > { %225 = vst.msk [vmem:[%s736_s15 + $0x20] sm:$0xff] %vm220_vm0, %v176_v6 }
  0xe4   : > { %363 = vst [vmem:[%s810_s21 + $0x18] sm:$0xff] (%p717_p9), %v362_v37 }
  0xea   : > { %v177_v7 = vpop.trf.xlu0  ;;  %v364_v38 = vld [vmem:[%s736_s15 + $0x20] sm:$0xff] (%p717_p9) }
  0xeb   : > { %226 = vst.msk [vmem:[%s736_s15 + $0x28] sm:$0xff] %vm220_vm0, %v177_v7 }
  0xec   : > { %365 = vst [vmem:[%s810_s21 + $0x20] sm:$0xff] (%p717_p9), %v364_v38 }
  0xf2   : > { %v178_v8 = vpop.trf.xlu0  ;;  %v366_v39 = vld [vmem:[%s736_s15 + $0x28] sm:$0xff] (%p717_p9) }
  0xf3   : > { %227 = vst.msk [vmem:[%s736_s15 + $0x30] sm:$0xff] %vm220_vm0, %v178_v8 }
  0xf4   : > { %367 = vst [vmem:[%s810_s21 + $0x28] sm:$0xff] (%p717_p9), %v366_v39 }
  0xfa   : > { %v179_v9 = vpop.trf.xlu0  ;;  %v368_v40 = vld [vmem:[%s736_s15 + $0x30] sm:$0xff] (%p717_p9) }
  0xfb   : > { %228 = vst.msk [vmem:[%s736_s15 + $0x38] sm:$0xff] %vm220_vm0, %v179_v9 }
  0xfc   : > { %369 = vst [vmem:[%s810_s21 + $0x30] sm:$0xff] (%p717_p9), %v368_v40 }
 0x102   : > { %v180_v10 = vpop.trf.xlu0  ;;  %v370_v41 = vld [vmem:[%s736_s15 + $0x38] sm:$0xff] (%p717_p9) }
 0x103   : > { %229 = vst.msk [vmem:[%s736_s15 + $0x40] sm:$0xff] %vm220_vm0, %v180_v10 }
 0x104   : > { %371 = vst [vmem:[%s810_s21 + $0x38] sm:$0xff] (%p717_p9), %v370_v41 }
 0x10a   : > { %v181_v11 = vpop.trf.xlu0  ;;  %v372_v42 = vld [vmem:[%s736_s15 + $0x40] sm:$0xff] (%p717_p9) }
 0x10b   : > { %230 = vst.msk [vmem:[%s736_s15 + $0x48] sm:$0xff] %vm220_vm0, %v181_v11 }
 0x10c   : > { %373 = vst [vmem:[%s810_s21 + $0x40] sm:$0xff] (%p717_p9), %v372_v42 }
 0x112   : > { %v182_v12 = vpop.trf.xlu0  ;;  %v374_v43 = vld [vmem:[%s736_s15 + $0x48] sm:$0xff] (%p717_p9) }
 0x113   : > { %231 = vst.msk [vmem:[%s736_s15 + $0x50] sm:$0xff] %vm220_vm0, %v182_v12 }
 0x114   : > { %375 = vst [vmem:[%s810_s21 + $0x48] sm:$0xff] (%p717_p9), %v374_v43 }
 0x11a   : > { %v183_v13 = vpop.trf.xlu0  ;;  %v376_v44 = vld [vmem:[%s736_s15 + $0x50] sm:$0xff] (%p717_p9) }
 0x11b   : > { %232 = vst.msk [vmem:[%s736_s15 + $0x58] sm:$0xff] %vm220_vm0, %v183_v13 }
 0x11c   : > { %377 = vst [vmem:[%s810_s21 + $0x50] sm:$0xff] (%p717_p9), %v376_v44 }
 0x122   : > { %v184_v14 = vpop.trf.xlu0  ;;  %v378_v45 = vld [vmem:[%s736_s15 + $0x58] sm:$0xff] (%p717_p9) }
 0x123   : > { %233 = vst.msk [vmem:[%s736_s15 + $0x60] sm:$0xff] %vm220_vm0, %v184_v14 }
 0x124   : > { %379 = vst [vmem:[%s810_s21 + $0x58] sm:$0xff] (%p717_p9), %v378_v45 }
 0x12a   : > { %v185_v15 = vpop.trf.xlu0  ;;  %v380_v46 = vld [vmem:[%s736_s15 + $0x60] sm:$0xff] (%p717_p9) }
 0x12b   : > { %234 = vst.msk [vmem:[%s736_s15 + $0x68] sm:$0xff] %vm220_vm0, %v185_v15 }
 0x12c   : > { %381 = vst [vmem:[%s810_s21 + $0x60] sm:$0xff] (%p717_p9), %v380_v46 }
 0x132   : > { %v186_v16 = vpop.trf.xlu0  ;;  %v382_v47 = vld [vmem:[%s736_s15 + $0x68] sm:$0xff] (%p717_p9) }
 0x133   : > { %235 = vst.msk [vmem:[%s736_s15 + $0x70] sm:$0xff] %vm220_vm0, %v186_v16 }
 0x134   : > { %383 = vst [vmem:[%s810_s21 + $0x68] sm:$0xff] (%p717_p9), %v382_v47 }
 0x13a   : > { %v187_v17 = vpop.trf.xlu0  ;;  %v384_v48 = vld [vmem:[%s736_s15 + $0x70] sm:$0xff] (%p717_p9) }
 0x13b   : > { %236 = vst.msk [vmem:[%s736_s15 + $0x78] sm:$0xff] %vm220_vm0, %v187_v17 }
 0x13c   : > { %385 = vst [vmem:[%s810_s21 + $0x70] sm:$0xff] (%p717_p9), %v384_v48 }
 0x142   : > { %v204_v18 = vpop.trf.xlu0  ;;  %v386_v49 = vld [vmem:[%s736_s15 + $0x78] sm:$0xff] (%p717_p9) }
 0x143   : > { %237 = vst.msk [vmem:[%s736_s15 + $0x80] sm:$0xff] %vm220_vm0, %v204_v18 }
 0x144   : > { %387 = vst [vmem:[%s810_s21 + $0x78] sm:$0xff] (%p717_p9), %v386_v49 }
 0x14a   : > { %v205_v19 = vpop.trf.xlu0  ;;  %v388_v50 = vld [vmem:[%s736_s15 + $0x80] sm:$0xff] (%p717_p9) }
 0x14b   : > { %238 = vst.msk [vmem:[%s736_s15 + $0x88] sm:$0xff] %vm220_vm0, %v205_v19 }
 0x14c   : > { %389 = vst [vmem:[%s810_s21 + $0x100] sm:$0xff] (%p717_p9), %v388_v50 }
 0x152   : > { %v206_v20 = vpop.trf.xlu0  ;;  %v390_v51 = vld [vmem:[%s736_s15 + $0x88] sm:$0xff] (%p717_p9) }
 0x153   : > { %239 = vst.msk [vmem:[%s736_s15 + $0x90] sm:$0xff] %vm220_vm0, %v206_v20 }
 0x154   : > { %391 = vst [vmem:[%s810_s21 + $0x108] sm:$0xff] (%p717_p9), %v390_v51 }
 0x15a   : > { %v207_v21 = vpop.trf.xlu0  ;;  %v392_v52 = vld [vmem:[%s736_s15 + $0x90] sm:$0xff] (%p717_p9) }
 0x15b   : > { %240 = vst.msk [vmem:[%s736_s15 + $0x98] sm:$0xff] %vm220_vm0, %v207_v21 }
 0x15c   : > { %393 = vst [vmem:[%s810_s21 + $0x110] sm:$0xff] (%p717_p9), %v392_v52 }
 0x162   : > { %v208_v22 = vpop.trf.xlu0  ;;  %v394_v53 = vld [vmem:[%s736_s15 + $0x98] sm:$0xff] (%p717_p9) }
 0x163   : > { %241 = vst.msk [vmem:[%s736_s15 + $0xa0] sm:$0xff] %vm220_vm0, %v208_v22 }
 0x164   : > { %395 = vst [vmem:[%s810_s21 + $0x118] sm:$0xff] (%p717_p9), %v394_v53 }
 0x16a   : > { %v209_v23 = vpop.trf.xlu0  ;;  %v396_v54 = vld [vmem:[%s736_s15 + $0xa0] sm:$0xff] (%p717_p9) }
 0x16b   : > { %242 = vst.msk [vmem:[%s736_s15 + $0xa8] sm:$0xff] %vm220_vm0, %v209_v23 }
 0x16c   : > { %397 = vst [vmem:[%s810_s21 + $0x120] sm:$0xff] (%p717_p9), %v396_v54 }
 0x172   : > { %v210_v24 = vpop.trf.xlu0  ;;  %v398_v55 = vld [vmem:[%s736_s15 + $0xa8] sm:$0xff] (%p717_p9) }
 0x173   : > { %243 = vst.msk [vmem:[%s736_s15 + $0xb0] sm:$0xff] %vm220_vm0, %v210_v24 }
 0x174   : > { %399 = vst [vmem:[%s810_s21 + $0x128] sm:$0xff] (%p717_p9), %v398_v55 }
 0x17a   : > { %v211_v25 = vpop.trf.xlu0  ;;  %v400_v56 = vld [vmem:[%s736_s15 + $0xb0] sm:$0xff] (%p717_p9) }
 0x17b   : > { %244 = vst.msk [vmem:[%s736_s15 + $0xb8] sm:$0xff] %vm220_vm0, %v211_v25 }
 0x17c   : > { %401 = vst [vmem:[%s810_s21 + $0x130] sm:$0xff] (%p717_p9), %v400_v56 }
 0x182   : > { %v212_v26 = vpop.trf.xlu0  ;;  %v402_v57 = vld [vmem:[%s736_s15 + $0xb8] sm:$0xff] (%p717_p9) }
 0x183   : > { %245 = vst.msk [vmem:[%s736_s15 + $0xc0] sm:$0xff] %vm220_vm0, %v212_v26 }
 0x184   : > { %403 = vst [vmem:[%s810_s21 + $0x138] sm:$0xff] (%p717_p9), %v402_v57 }
 0x18a   : > { %v213_v27 = vpop.trf.xlu0  ;;  %v404_v58 = vld [vmem:[%s736_s15 + $0xc0] sm:$0xff] (%p717_p9) }
 0x18b   : > { %246 = vst.msk [vmem:[%s736_s15 + $0xc8] sm:$0xff] %vm220_vm0, %v213_v27 }
 0x18c   : > { %405 = vst [vmem:[%s810_s21 + $0x140] sm:$0xff] (%p717_p9), %v404_v58 }
 0x192   : > { %v214_v28 = vpop.trf.xlu0  ;;  %v406_v59 = vld [vmem:[%s736_s15 + $0xc8] sm:$0xff] (%p717_p9) }
 0x193   : > { %247 = vst.msk [vmem:[%s736_s15 + $0xd0] sm:$0xff] %vm220_vm0, %v214_v28 }
 0x194   : > { %407 = vst [vmem:[%s810_s21 + $0x148] sm:$0xff] (%p717_p9), %v406_v59 }
 0x19a   : > { %v215_v29 = vpop.trf.xlu0  ;;  %v408_v60 = vld [vmem:[%s736_s15 + $0xd0] sm:$0xff] (%p717_p9) }
 0x19b   : > { %248 = vst.msk [vmem:[%s736_s15 + $0xd8] sm:$0xff] %vm220_vm0, %v215_v29 }
 0x19c   : > { %409 = vst [vmem:[%s810_s21 + $0x150] sm:$0xff] (%p717_p9), %v408_v60 }
 0x1a2   : > { %v216_v30 = vpop.trf.xlu0  ;;  %v410_v61 = vld [vmem:[%s736_s15 + $0xd8] sm:$0xff] (%p717_p9) }
 0x1a3   : > { %249 = vst.msk [vmem:[%s736_s15 + $0xe0] sm:$0xff] %vm220_vm0, %v216_v30 }
 0x1a4   : > { %411 = vst [vmem:[%s810_s21 + $0x158] sm:$0xff] (%p717_p9), %v410_v61 }
 0x1aa   : > { %v217_v31 = vpop.trf.xlu0  ;;  %v412_v62 = vld [vmem:[%s736_s15 + $0xe0] sm:$0xff] (%p717_p9) }
 0x1ab   : > { %250 = vst.msk [vmem:[%s736_s15 + $0xe8] sm:$0xff] %vm220_vm0, %v217_v31 }
 0x1ac   : > { %413 = vst [vmem:[%s810_s21 + $0x160] sm:$0xff] (%p717_p9), %v412_v62 }
 0x1b2   : > { %v218_v32 = vpop.trf.xlu0  ;;  %v414_v63 = vld [vmem:[%s736_s15 + $0xe8] sm:$0xff] (%p717_p9) }
 0x1b3   : > { %251 = vst.msk [vmem:[%s736_s15 + $0xf0] sm:$0xff] %vm220_vm0, %v218_v32 }
 0x1b4   : > { %415 = vst [vmem:[%s810_s21 + $0x168] sm:$0xff] (%p717_p9), %v414_v63 }
 0x1b7   : > { %259 = sbr.rel (!%p717_p9) target bundleno = 452 (0x1c4), region = 32 }
 0x1ba   : > { %v219_v33 = vpop.trf.xlu0  ;;  %v416_v0 = vld [vmem:[%s736_s15 + $0xf0] sm:$0xff] (%p717_p9) }
 0x1bb   : > { %252 = vst.msk [vmem:[%s736_s15 + $0xf8] sm:$0xff] %vm220_vm0, %v219_v33 }
 0x1bc   : > { %417 = vst [vmem:[%s810_s21 + $0x170] sm:$0xff] %v416_v0 }
 0x1c2   : > { %v418_v1 = vld [vmem:[%s736_s15 + $0xf8] sm:$0xff] }
 0x1c3   : > { %419 = vst [vmem:[%s810_s21 + $0x178] sm:$0xff] %v418_v1 }
 0x1c4 PF: > { %s14_s11 = sadd.s32 1, %s652_s11   ;;  %s897_s6 = smov %s636_s7 }
 0x1c5   : > { %p11_p1 = scmp.ge.s32.totalorder %s14_s11, 4   ;;  %s898_s7 = smov %s640_s8 }
 0x1c6   : > { %s899_s8 = smov %s715_s18  ;;  %s900_s9 = smov %s648_s10 }
 0x1c7   : > { %s901_s10 = smov %s903_s13  ;;  %13 = sbr.rel (!%p11_p1) target bundleno = 4 (0x4), region = 102 }
 0x1cc   :  { %435 = vsyncpa [#allocation3], 1 }
 0x1cd   :  { %437 = vsyncpa [#allocation3 + $0x1], 1 }

</bundles_post_ra>
